<compile_context>
chip_gen: v5e
topology: v5e:2x2
jax: 0.10.0
libtpu: 0.0.40
codegen_flags: <defaults>
</compile_context>

<pallas_src>
import functools

import jax
import jax.numpy as jnp
from jax import lax
from jax.experimental import pallas as pl
from jax.experimental.pallas import tpu as pltpu

BN_EPS = 1e-5
IN_F, H1, H2, N_CLASSES = 96, 32, 11, 3


def _round_up(n, m):
    return (n + m - 1) // m * m


def _mlp_kernel(x_ref,
                w1_ref, b1_ref,
                w2t_ref, b2t_ref,
                w3t_ref, b3t_ref,
                out_ref):
    """Fused eval-mode forward for one batch tile.

    Layer 1 runs batch-on-sublanes ((tb, 96) @ (96, 32)); everything after is
    batch-on-lanes so the bias/ReLU/log_softmax epilogue touches ~16x fewer
    vregs and the final store is a lane-dense (3, tb) write.
    """
    # ---- layer 1: (tb, 96) x (96, 32) -> (tb, 32) -------------------------
    x = x_ref[...].astype(jnp.bfloat16)          # f32 from HBM, free VPU cast
    z1 = jnp.dot(x, w1_ref[...], preferred_element_type=jnp.float32)
    h1 = jnp.maximum(z1 + b1_ref[...], 0.0)      # folded Linear+BN bias, ReLU
    h1b = h1.astype(jnp.bfloat16)                # (tb, 32)

    # ---- layer 2 (lane-dense): (11, 32) @ (tb, 32)^T -> (11, tb) ----------
    z2 = lax.dot_general(w2t_ref[...], h1b,
                         dimension_numbers=(((1,), (1,)), ((), ())),
                         preferred_element_type=jnp.float32)
    h2 = jnp.maximum(z2 + b2t_ref[...], 0.0)     # bias (11, 1) broadcasts on lanes
    h2b = h2.astype(jnp.bfloat16)

    # ---- layer 3 (lane-dense): (3, 11) @ (11, tb) -> (3, tb) --------------
    z3 = jnp.dot(w3t_ref[...], h2b, preferred_element_type=jnp.float32)
    h3 = jnp.maximum(z3 + b3t_ref[...], 0.0)

    # ---- log_softmax over classes (axis 0, size 3); batch stays on lanes --
    m = jnp.max(h3, axis=0, keepdims=True)
    e = jnp.exp(h3 - m)
    lse = m + jnp.log(jnp.sum(e, axis=0, keepdims=True))
    out_ref[...] = (h3 - lse).astype(out_ref.dtype)


@functools.partial(jax.jit, static_argnames=("tile_b",))
def text_classifier_forward(x, kernel_params, tile_b=8192):
    """x: (B, 96) float32 -> log-probs (B, 3) float32 (eval-mode forward)."""
    w1, b1, w2t, b2t, w3t, b3t = kernel_params
    B = x.shape[0]

    # --- batch tile selection ----------------------------------------------
    # Block dims must be multiples of (8, 128) or equal the full array dim, so:
    #   * B <= 128: one exact block (tb == B, always legal).
    #   * B  > 128: tb is a multiple of 128, never larger than the array, and
    #     capped so the grid has >= 2 steps (v7x has 2 TensorCores to feed).
    if B <= 128:
        tb = B
    else:
        tb = min(_round_up(max(tile_b, 128), 128), (B // 128) * 128)
        if pl.cdiv(B, tb) < 2:
            tb = min(_round_up(pl.cdiv(B, 2), 128), (B // 128) * 128)
    grid = (pl.cdiv(B, tb),)   # ragged last tile is masked; no jnp.pad copy of x

    # Rough double-buffered footprint (~1.5-3 KB/row incl. intermediates);
    # raise the scoped VMEM limit accordingly. On v7x (64 MiB VMEM) keep
    # tile_b <= ~16K; on v5e/v6e (128 MiB) up to ~32K is fine.
    vmem_limit = int(min(110 * 2**20, max(32 * 2**20, 3000 * tb)))

    const = lambda i: (0, 0)   # weights/biases: same block every step -> one DMA

    out_t = pl.pallas_call(
        _mlp_kernel,
        out_shape=jax.ShapeDtypeStruct((N_CLASSES, B), jnp.float32),
        grid=grid,
        in_specs=[
            pl.BlockSpec((tb, IN_F), lambda i: (i, 0)),            # x: f32 from HBM
            pl.BlockSpec(w1.shape, const), pl.BlockSpec(b1.shape, const),
            pl.BlockSpec(w2t.shape, const), pl.BlockSpec(b2t.shape, const),
            pl.BlockSpec(w3t.shape, const), pl.BlockSpec(b3t.shape, const),
        ],
        out_specs=pl.BlockSpec((N_CLASSES, tb), lambda i: (0, i)),  # lane-dense store
        compiler_params=pltpu.CompilerParams(
            dimension_semantics=("parallel",),
            vmem_limit_bytes=vmem_limit),
    )(x, w1, b1, w2t, b2t, w3t, b3t)

    # Tiny (3, B) -> (B, 3) transpose outside the kernel to match the PyTorch
    # module's output layout (negligible vs. the 384 B/row of x reads).
    return out_t.T


# ---------------------------------------------------------------------------
# Parameter handling (mimics nn.Linear default init + fresh BatchNorm1d stats)
# ---------------------------------------------------------------------------

def init_raw_params(key):
    """Per layer: (w (in,out), b, gamma, beta, running_mean, running_var)."""
    dims = [(IN_F, H1), (H1, H2), (H2, N_CLASSES)]
    layers = []
    for fan_in, fan_out in dims:
        key, kw, kb = jax.random.split(key, 3)
        bound = 1.0 / jnp.sqrt(jnp.float32(fan_in))
        w = jax.random.uniform(kw, (fan_in, fan_out), jnp.float32, -bound, bound)
        b = jax.random.uniform(kb, (fan_out,), jnp.float32, -bound, bound)
        gamma = jnp.ones((fan_out,), jnp.float32)
        beta = jnp.zeros((fan_out,), jnp.float32)
        mean = jnp.zeros((fan_out,), jnp.float32)
        var = jnp.ones((fan_out,), jnp.float32)
        layers.append((w, b, gamma, beta, mean, var))
    return tuple(layers)


def fold_bn_params(raw_params):
    """Fold eval-mode BN into each Linear and lay weights out for the kernel.

    Layer 1 stays (in, out) / bias (1, out) (batch on sublanes).  Layers 2/3
    are stored transposed, (out, in), with biases as (out, 1) columns, because
    the kernel computes those layers batch-on-lanes.  Weights -> bf16 (MXU),
    biases -> f32.
    """
    folded = []
    for li, (w, b, gamma, beta, mean, var) in enumerate(raw_params):
        scale = gamma / jnp.sqrt(var + BN_EPS)                   # (out,)
        w_f = (w * scale[None, :]).astype(jnp.bfloat16)          # (in, out)
        b_f = ((b - mean) * scale + beta).astype(jnp.float32)    # (out,)
        if li == 0:
            folded += [w_f, b_f.reshape(1, -1)]                  # (96,32), (1,32)
        else:
            folded += [w_f.T, b_f.reshape(-1, 1)]                # (out,in), (out,1)
    return tuple(folded)


# ---------------------------------------------------------------------------
# Pure-JAX references
# ---------------------------------------------------------------------------

def reference_forward(x, kernel_params):
    """Same mixed-precision computation as the kernel (bf16 matmuls, f32 epilogue)."""
    w1, b1, w2t, b2t, w3t, b3t = kernel_params

    def block(h, w, b):
        z = jnp.dot(h.astype(jnp.bfloat16), w, preferred_element_type=jnp.float32)
        return jnp.maximum(z + b, 0.0)

    h = block(x, w1, b1.reshape(1, -1))
    h = block(h, w2t.T, b2t.reshape(1, -1))
    h = block(h, w3t.T, b3t.reshape(1, -1))
    return jax.nn.log_softmax(h, axis=-1)


def reference_forward_f32(x, raw_params):
    """Original eval-mode module semantics in full f32 (sanity check for folding)."""
    h = x
    for (w, b, gamma, beta, mean, var) in raw_params:
        z = h @ w + b
        z = (z - mean) / jnp.sqrt(var + BN_EPS) * gamma + beta
        h = jnp.maximum(z, 0.0)
    return jax.nn.log_softmax(h, axis=-1)


if __name__ == "__main__":
    key = jax.random.PRNGKey(0)
    kx, kp = jax.random.split(key)

    raw_params = init_raw_params(kp)
    kernel_params = fold_bn_params(raw_params)

    # Small deterministic example (single exact block path).
    B = 8
    x = jax.random.normal(kx, (B, IN_F), jnp.float32)
    out = jax.block_until_ready(text_classifier_forward(x, kernel_params))

    ref = reference_forward(x, kernel_params)
    ref_f32 = reference_forward_f32(x, raw_params)
    assert out.shape == (B, N_CLASSES)
    assert jnp.allclose(out, ref, atol=1e-3, rtol=1e-3), "mismatch vs bf16 reference"
    assert jnp.allclose(out, ref_f32, atol=5e-2, rtol=5e-2), "mismatch vs f32 reference"

    # Multi-tile + ragged-last-block path (grid > 1, masked partial tile).
    B2 = 300
    x2 = jax.random.normal(jax.random.PRNGKey(1), (B2, IN_F), jnp.float32)
    out2 = jax.block_until_ready(
        text_classifier_forward(x2, kernel_params, tile_b=128))
    ref2 = reference_forward(x2, kernel_params)
    assert out2.shape == (B2, N_CLASSES)
    assert jnp.allclose(out2, ref2, atol=1e-3, rtol=1e-3), "mismatch on ragged batch"

    # TODO(synk): training-mode BatchNorm (batch statistics), Dropout randomness,
    # and the Adam learn/validate loops are not reproduced; this is the
    # deterministic eval-mode forward only.

    print("KERNEL_OK")
</pallas_src>

<mosaic_0001>
module attributes {stable_mosaic.version = 11 : i64} {
  func.func @_mlp_kernel(%arg0: i32, %arg1: memref<8x96xf32, #tpu.memory_space<vmem>>, %arg2: memref<96x32xbf16, #tpu.memory_space<vmem>>, %arg3: memref<1x32xf32, #tpu.memory_space<vmem>>, %arg4: memref<11x32xbf16, #tpu.memory_space<vmem>>, %arg5: memref<11x1xf32, #tpu.memory_space<vmem>>, %arg6: memref<3x11xbf16, #tpu.memory_space<vmem>>, %arg7: memref<3x1xf32, #tpu.memory_space<vmem>>, %arg8: memref<3x8xf32, #tpu.memory_space<vmem>>) attributes {dimension_semantics = [#tpu.dimension_semantics<parallel>], iteration_bounds = array<i64: 1>, scalar_prefetch = 0 : i64, scratch_operands = 0 : i64, tpu.core_type = #tpu.core_type<tc>, window_params = [{transform_indices = @transform_0, window_bounds = array<i64: 8, 96>}, {pipeline_mode = #tpu.pipeline_mode<synchronous>, transform_indices = @transform_1, window_bounds = array<i64: 96, 32>}, {pipeline_mode = #tpu.pipeline_mode<synchronous>, transform_indices = @transform_2, window_bounds = array<i64: 1, 32>}, {pipeline_mode = #tpu.pipeline_mode<synchronous>, transform_indices = @transform_3, window_bounds = array<i64: 11, 32>}, {pipeline_mode = #tpu.pipeline_mode<synchronous>, transform_indices = @transform_4, window_bounds = array<i64: 11, 1>}, {pipeline_mode = #tpu.pipeline_mode<synchronous>, transform_indices = @transform_5, window_bounds = array<i64: 3, 11>}, {pipeline_mode = #tpu.pipeline_mode<synchronous>, transform_indices = @transform_6, window_bounds = array<i64: 3, 1>}, {transform_indices = @transform_7, window_bounds = array<i64: 3, 8>}]} {
    %c0 = arith.constant 0 : index
    %c0_0 = arith.constant 0 : index
    %0 = vector.load %arg1[%c0, %c0_0] : memref<8x96xf32, #tpu.memory_space<vmem>>, vector<8x96xf32>
    %1 = arith.truncf %0 : vector<8x96xf32> to vector<8x96xbf16>
    %c0_1 = arith.constant 0 : index
    %c0_2 = arith.constant 0 : index
    %2 = vector.load %arg2[%c0_1, %c0_2] : memref<96x32xbf16, #tpu.memory_space<vmem>>, vector<96x32xbf16>
    %cst = arith.constant dense<0.000000e+00> : vector<8x32xf32>
    %3 = tpu.matmul %1, %2, %cst {dimension_numbers = #tpu.dot_dimension_numbers<[1], [0], [0], [1], [0, 0, 1, 1], [], []>} : vector<8x96xbf16>, vector<96x32xbf16>, vector<8x32xf32> -> vector<8x32xf32>
    %c0_3 = arith.constant 0 : index
    %c0_4 = arith.constant 0 : index
    %4 = vector.load %arg3[%c0_3, %c0_4] : memref<1x32xf32, #tpu.memory_space<vmem>>, vector<1x32xf32>
    %5 = vector.broadcast %4 : vector<1x32xf32> to vector<8x32xf32>
    %6 = arith.addf %3, %5 : vector<8x32xf32>
    %cst_5 = arith.constant 0.000000e+00 : f32
    %7 = vector.broadcast %cst_5 : f32 to vector<8x32xf32>
    %8 = arith.maximumf %6, %7 : vector<8x32xf32>
    %9 = arith.truncf %8 : vector<8x32xf32> to vector<8x32xbf16>
    %c0_6 = arith.constant 0 : index
    %c0_7 = arith.constant 0 : index
    %10 = vector.load %arg4[%c0_6, %c0_7] : memref<11x32xbf16, #tpu.memory_space<vmem>>, vector<11x32xbf16>
    %cst_8 = arith.constant dense<0.000000e+00> : vector<11x8xf32>
    %11 = tpu.matmul %10, %9, %cst_8 {dimension_numbers = #tpu.dot_dimension_numbers<[1], [1], [0], [0], [0, 0, 1, 0], [], []>} : vector<11x32xbf16>, vector<8x32xbf16>, vector<11x8xf32> -> vector<11x8xf32>
    %c0_9 = arith.constant 0 : index
    %c0_10 = arith.constant 0 : index
    %12 = vector.load %arg5[%c0_9, %c0_10] : memref<11x1xf32, #tpu.memory_space<vmem>>, vector<11x1xf32>
    %13 = vector.broadcast %12 : vector<11x1xf32> to vector<11x8xf32>
    %14 = arith.addf %11, %13 : vector<11x8xf32>
    %cst_11 = arith.constant 0.000000e+00 : f32
    %15 = vector.broadcast %cst_11 : f32 to vector<11x8xf32>
    %16 = arith.maximumf %14, %15 : vector<11x8xf32>
    %17 = arith.truncf %16 : vector<11x8xf32> to vector<11x8xbf16>
    %c0_12 = arith.constant 0 : index
    %c0_13 = arith.constant 0 : index
    %18 = vector.load %arg6[%c0_12, %c0_13] : memref<3x11xbf16, #tpu.memory_space<vmem>>, vector<3x11xbf16>
    %cst_14 = arith.constant dense<0.000000e+00> : vector<3x8xf32>
    %19 = tpu.matmul %18, %17, %cst_14 {dimension_numbers = #tpu.dot_dimension_numbers<[1], [0], [0], [1], [0, 0, 1, 1], [], []>} : vector<3x11xbf16>, vector<11x8xbf16>, vector<3x8xf32> -> vector<3x8xf32>
    %c0_15 = arith.constant 0 : index
    %c0_16 = arith.constant 0 : index
    %20 = vector.load %arg7[%c0_15, %c0_16] : memref<3x1xf32, #tpu.memory_space<vmem>>, vector<3x1xf32>
    %21 = vector.broadcast %20 : vector<3x1xf32> to vector<3x8xf32>
    %22 = arith.addf %19, %21 : vector<3x8xf32>
    %cst_17 = arith.constant 0.000000e+00 : f32
    %23 = vector.broadcast %cst_17 : f32 to vector<3x8xf32>
    %24 = arith.maximumf %22, %23 : vector<3x8xf32>
    %cst_18 = arith.constant dense<0xFF800000> : vector<8xf32>
    %25 = vector.multi_reduction <maximumf>, %24, %cst_18 [0] : vector<3x8xf32> to vector<8xf32>
    %26 = vector.shape_cast %25 : vector<8xf32> to vector<1x8xf32>
    %27 = vector.broadcast %26 : vector<1x8xf32> to vector<3x8xf32>
    %28 = arith.subf %24, %27 : vector<3x8xf32>
    %29 = math.exp %28 : vector<3x8xf32>
    %cst_19 = arith.constant dense<0.000000e+00> : vector<8xf32>
    %30 = vector.multi_reduction <add>, %29, %cst_19 [0] : vector<3x8xf32> to vector<8xf32>
    %31 = vector.shape_cast %30 : vector<8xf32> to vector<1x8xf32>
    %32 = math.log %31 : vector<1x8xf32>
    %33 = arith.addf %26, %32 : vector<1x8xf32>
    %34 = vector.broadcast %33 : vector<1x8xf32> to vector<3x8xf32>
    %35 = arith.subf %24, %34 : vector<3x8xf32>
    %c0_20 = arith.constant 0 : index
    %c0_21 = arith.constant 0 : index
    %36 = vector.load %arg8[%c0_20, %c0_21] : memref<3x8xf32, #tpu.memory_space<vmem>>, vector<3x8xf32>
    tpu.vector_store %arg8[%c0_20, %c0_21], %35 {strides = array<i32>} : memref<3x8xf32, #tpu.memory_space<vmem>>, vector<3x8xf32>,
    return
  }
  func.func @transform_0(%arg0: i32) -> (i32, i32) {
    %c0_i32 = arith.constant 0 : i32
    %c0_i32_0 = arith.constant 0 : i32
    return %arg0, %c0_i32 : i32, i32
  }
  func.func @transform_1(%arg0: i32) -> (i32, i32) {
    %c0_i32 = arith.constant 0 : i32
    %c0_i32_0 = arith.constant 0 : i32
    %c0_i32_1 = arith.constant 0 : i32
    return %c0_i32, %c0_i32_0 : i32, i32
  }
  func.func @transform_2(%arg0: i32) -> (i32, i32) {
    %c0_i32 = arith.constant 0 : i32
    %c0_i32_0 = arith.constant 0 : i32
    %c0_i32_1 = arith.constant 0 : i32
    return %c0_i32, %c0_i32_0 : i32, i32
  }
  func.func @transform_3(%arg0: i32) -> (i32, i32) {
    %c0_i32 = arith.constant 0 : i32
    %c0_i32_0 = arith.constant 0 : i32
    %c0_i32_1 = arith.constant 0 : i32
    return %c0_i32, %c0_i32_0 : i32, i32
  }
  func.func @transform_4(%arg0: i32) -> (i32, i32) {
    %c0_i32 = arith.constant 0 : i32
    %c0_i32_0 = arith.constant 0 : i32
    %c0_i32_1 = arith.constant 0 : i32
    return %c0_i32, %c0_i32_0 : i32, i32
  }
  func.func @transform_5(%arg0: i32) -> (i32, i32) {
    %c0_i32 = arith.constant 0 : i32
    %c0_i32_0 = arith.constant 0 : i32
    %c0_i32_1 = arith.constant 0 : i32
    return %c0_i32, %c0_i32_0 : i32, i32
  }
  func.func @transform_6(%arg0: i32) -> (i32, i32) {
    %c0_i32 = arith.constant 0 : i32
    %c0_i32_0 = arith.constant 0 : i32
    %c0_i32_1 = arith.constant 0 : i32
    return %c0_i32, %c0_i32_0 : i32, i32
  }
  func.func @transform_7(%arg0: i32) -> (i32, i32) {
    %c0_i32 = arith.constant 0 : i32
    %c0_i32_0 = arith.constant 0 : i32
    return %c0_i32, %arg0 : i32, i32
  }
}

</mosaic_0001>

<bundles_post_ra>
// kernel: text_classifier_forward.1
= control target key start
LH: loop header
LB: loop body
LE: loop exit
PB: predicated region body
PF: predicated region fallthrough
CT: control target
= control target key end

     0   :  { %s380_s0 = inlined_call_operand.vmem [shape: f32[8,96], index: 0, kind: input, shape index: {}]   ;;  %s381_s1 = inlined_call_operand.vmem [shape: bf16[96,32], index: 1, kind: input, shape index: {}]   ;;  %s382_s2 = inlined_call_operand.vmem [shape: f32[1,32], index: 2, kind: input, shape index: {}]   ;;  %s383_s3 = inlined_call_operand.vmem [shape: bf16[11,32], index: 3, kind: input, shape index: {}]   ;;  %s384_s4 = inlined_call_operand.vmem [shape: f32[11,1], index: 4, kind: input, shape index: {}]   ;;  %s385_s5 = inlined_call_operand.vmem [shape: bf16[3,11], index: 5, kind: input, shape index: {}]   ;;  %s386_s6 = inlined_call_operand.vmem [shape: f32[3,1], index: 6, kind: input, shape index: {}]   ;;  %s387_s7 = inlined_call_operand.hbm [shape: f32[3,8], index: 7, kind: output, shape index: {}]  }
   0x1   :  { %v251_v0 = vld [vmem:[%s381_s1 + $0x28] sm:$0xff]  ;;  %v250_v1 = vld [vmem:[%s381_s1 + $0x20] sm:$0xff] }
   0x2   :  { %88 = vmatpush.bf16.msra.mxu0 %v251_v0 }
   0x3   :  { %12 = vsyncpa [#allocation3], 0  ;;  %v249_v2 = vld [vmem:[%s381_s1 + $0x18] sm:$0xff]  ;;  %v248_v3 = vld [vmem:[%s381_s1 + $0x10] sm:$0xff]  ;;  %vm82_vm0 = vcmask 785408   ;;  %v289_v9 = vmov 0  }
   0x4   :  { %v247_v4 = vld [vmem:[%s381_s1 + $0x8] sm:$0xff]  ;;  %v246_v5 = vld [vmem:[%s381_s1] sm:$0xff]  ;;  %256 = vset.pattern.permute.xlu0 %v289_v9  ;;  %257 = vset.pattern.permute.xlu1 %v289_v9  ;;  %vm120_vm1 = vcmask 261120   ;;  %vm155_vm2 = vcmask 1044480   ;;  %vm156_vm3 = vcmask 1045504   ;;  %v290_v28 = vmov 65535  }
   0x5   :  { %v28_v6 = vld [vmem:[%s380_s0] sm:$0xff]  ;;  %v104_v10 = vld [vmem:[%s384_s4 + $0x8] sm:$0x7]  ;;  %v157_v29 = vsel %vm155_vm2, 4294967295, %v290_v28  ;;  %vm151_vm4 = vcmask 89088   ;;  %vm176_vm5 = vcmask 59392  }
   0x6   :  { %89 = vmatpush.bf16.msra.mxu0 %v250_v1  ;;  %v29_v7 = vpack.c.bf16 %v28_v6, %v28_v6  ;;  %v103_v8 = vld [vmem:[%s384_s4] sm:$0xff]  ;;  %v158_v32 = vsel %vm156_vm3, %v157_v29, 0  ;;  %s206_s26 = sshll.u32 %s387_s7, 4  ;;  %s207_s26 = int_to_ptr.hbm [resolvable:$true] %s206_s26 }
   0x7   :  { %107 = vperm.xlu0 %256, %v103_v8   ;;  %v258_v11 = vld [vmem:[%s382_s2] ss:$0 sm:$0xff]  ;;  %v252_v19 = vld [vmem:[%s383_s3] sm:$0x30] }
   0x8   :  { %v242_v18 = vld [vmem:[%s383_s3] sm:$0xf] }
   0x9   :  { %v243_v20 = vor.u32 %v252_v19, %v242_v18  ;;  %v145_v21 = vld [vmem:[%s386_s6] sm:$0x7] }
   0xa   :  { %90 = vmatpush.bf16.msra.mxu0 %v249_v2  ;;  %148 = vperm.xlu1 %257, %v145_v21   ;;  %v144_v35 = vld [vmem:[%s385_s5] sm:$0x3]  ;;  %s291_s5 = smov [#allocation2]  }
   0xb   :  { %s204_s6 = sshll.u32 %s291_s5, 4  ;;  %s205_s6 = int_to_ptr.vmem [resolvable:$true] %s204_s6 }
   0xe   :  { %91 = vmatpush.bf16.msra.mxu0 %v248_v3 }
   0xf   :  { %112 = vperm.xlu0 %256, %v104_v10  }
  0x12   :  { %92 = vmatpush.bf16.msra.mxu0 %v247_v4 }
  0x16   :  { %93 = vmatpush.bf16.msra.mxu0 %v246_v5 }
  0x19   :  { %239 = vmatmul.msk.bf16.vlgmr.msra.gmra.mxu0 %vm82_vm0, %v29_v7 }
  0x79   :  { %v108_v22 = vpop.permute.xlu0 %107 }
  0x7c   :  { %v149_v36 = vpop.permute.xlu1 %148 }
  0x81   :  { %v113_v25 = vpop.permute.xlu0 %112 }
  0x96   :  { %v95_v12 = vpop.f32.mrf.mxu0 }
  0x97   :  { %v96_v13 = vadd.f32 %v258_v11, %v95_v12 }
  0x99   :  { %v99_v14 = vmax.f32 %v96_v13, 0.0 }
  0x9b   :  { %v100_v15 = vpack.c.bf16 %v99_v14, %v99_v14 }
  0x9d   :  { %v125_v16 = vsel %vm120_vm1, %v100_v15, 0 }
  0x9e   :  { %v97_v17 = vpop.f32.mrf.mxu0  ;;  %134 = vmatpush.bf16.xpose.msra.mxu1 %v125_v16 }
  0xa5   :  { %244 = vmatmul.msk.bf16.vlgmr.msra.gmra.mxu1 %vm120_vm1, %v243_v20 }
 0x122   :  { %v136_v23 = vpop.f32.mrf.mxu1 }
 0x123   :  { %v137_v24 = vadd.f32 %v136_v23, %v108_v22 }
 0x125   :  { %v141_v30 = vmax.f32 %v137_v24, 0.0 }
 0x12a   :  { %v138_v26 = vpop.f32.mrf.mxu1 }
 0x12b   :  { %v139_v27 = vadd.f32 %v138_v26, %v113_v25 }
 0x12d   :  { %v142_v31 = vmax.f32 %v139_v27, 0.0 }
 0x12f   :  { %v143_v33 = vpack.c.bf16 %v142_v31, %v141_v30 }
 0x131   :  { %v160_v34 = vand.u32 %v158_v32, %v143_v33 }
 0x133   :  { %169 = vmatpush.bf16.msra.mxu2 %v160_v34 }
 0x136   :  { %245 = vmatmul.msk.bf16.vlgmr.msra.gmra.mxu2 %vm151_vm4, %v144_v35 }
 0x1b9   :  { %v171_v37 = vpop.f32.mrf.mxu2 }
 0x1ba   :  { %v172_v38 = vadd.f32 %v171_v37, %v149_v36 }
 0x1bc   :  { %v175_v39 = vmax.f32 %v172_v38, 0.0 }
 0x1be   :  { %v177_v40 = vsel %vm176_vm5, %v175_v39, -inf }
 0x1bf   :  { %v178_v41 = vrot.slane %v177_v40, 4 }
 0x1c1   :  { %v179_v42 = vmax.f32 %v177_v40, %v178_v41  ;;  %v173_v43 = vpop.f32.mrf.mxu2 }
 0x1c3   :  { %v180_v44 = vrot.slane %v179_v42, 2 }
 0x1c5   :  { %v181_v45 = vmax.f32 %v179_v42, %v180_v44 }
 0x1c7   :  { %v182_v46 = vrot.slane %v181_v45, 1 }
 0x1c9   :  { %v183_v47 = vmax.f32 %v181_v45, %v182_v46 }
 0x1cb   :  { %v184_v48 = vsub.f32 %v175_v39, %v183_v47 }
 0x1cd   :  { %v185_v49 = vmul.f32 1.442695, %v184_v48 }
 0x1cf   :  { %259 = vpow2.f32 %v185_v49 }
 0x1d5   :  { %v260_v50 = vpop.eup %259 }
 0x1d6   :  { %v187_v51 = vsel %vm176_vm5, %v260_v50, 0.0 }
 0x1d7   :  { %v188_v52 = vrot.slane %v187_v51, 4 }
 0x1d9   :  { %v189_v53 = vadd.f32 %v188_v52, %v187_v51 }
 0x1db   :  { %v190_v54 = vrot.slane %v189_v53, 2 }
 0x1dd   :  { %v191_v55 = vadd.f32 %v190_v54, %v189_v53 }
 0x1df   :  { %v192_v56 = vrot.slane %v191_v55, 1 }
 0x1e1   :  { %v193_v57 = vadd.f32 %v192_v56, %v191_v55 }
 0x1e3   :  { %261 = vlog2.f32 %v193_v57 }
 0x1e9   :  { %v262_v58 = vpop.eup %261 }
 0x1ea   :  { %v195_v59 = vmul.f32 0.6931472, %v262_v58 }
 0x1ec   :  { %v196_v60 = vadd.f32 %v195_v59, %v183_v47 }
 0x1ee   :  { %v197_v61 = vsub.f32 %v175_v39, %v196_v60 }
 0x1f0   :  { %198 = vst.msk [vmem:[#allocation2] sm:$0x7] %vm176_vm5, %v197_v61 }
 0x1f1   :  { %209 = dma.vmem_to_hbm [thread:$0]  %s205_s6, 64, %s207_s26, [#allocation3]  }
 0x1f2   :  { %287 = dma.done.wait [#allocation3], 64  }
 0x1f3   :  { %288 = vsyncadd [#allocation3], 4294967232 }
 0x1f4   :  { %214 = vsyncpa [#allocation3], 1 }

</bundles_post_ra>
